<compile_context>
chip_gen: v6e
topology: v6e:2x2x1
jax: 0.10.0
libtpu: 0.0.40
codegen_flags: <defaults>
</compile_context>

<pallas_src>
import math
from functools import partial

import jax
import jax.numpy as jnp
from jax.experimental import pallas as pl
# Note: pltpu (scratch / DMA / CompilerParams) is not needed — no grid, no scratch,
# everything defaults to VMEM for a single-invocation kernel of this size.


def kw_attn_kernel(q_ref, kv_ref, wq_ref, bq_ref, wk_ref, bk_ref, wo_ref, bo_ref,
                   out_ref, *, batch, q_size, kv_size, num_heads, head_dim):
    q2 = q_ref[...]      # (B*Qs,  H)
    kv2 = kv_ref[...]    # (B*KVs, H)

    acc = jnp.zeros(out_ref.shape, jnp.float32)           # (B*Qs, H) output accumulator

    for h in range(num_heads):                             # static, fully unrolled over heads
        # Per-head projections.  Weights were pre-split per head at prep time and
        # the 1/sqrt(head_dim) scale is already folded into wq/bq, so there is no
        # lane-minor activation slicing and no per-head scale multiply here.
        Qh = jnp.dot(q2, wq_ref[h], preferred_element_type=jnp.float32) + bq_ref[h]   # (B*Qs,  hd)
        Kh = jnp.dot(kv2, wk_ref[h], preferred_element_type=jnp.float32) + bk_ref[h]  # (B*KVs, hd)
        # Module quirk: V = self.key(KV)  ->  reuse Kh, no second projection.

        # Sublane-aligned reshapes (Qs = 8, KVs = 16 -> multiples of 8): free relabelings.
        Qb = Qh.reshape(batch, q_size, head_dim)            # (B, Qs,  hd)
        Kb = Kh.reshape(batch, kv_size, head_dim)            # (B, KVs, hd)

        # Scores: contract the last dims directly — no materialized K^T.
        s = jnp.einsum("bqd,bkd->bqk", Qb, Kb,
                       preferred_element_type=jnp.float32)   # (B, Qs, KVs)

        # Softmax over dim=-2 (the *query* axis), exactly as F.softmax(..., dim=-2).
        m = jnp.max(s, axis=1, keepdims=True)
        e = jnp.exp(s - m)
        inv = pl.reciprocal(jnp.sum(e, axis=1, keepdims=True), approx=False)
        w = e * inv

        ctx = jnp.einsum("bqk,bkd->bqd", w, Kb,
                         preferred_element_type=jnp.float32)  # (B, Qs, hd)  (V == K)

        # Per-head slice of the final projection; summing over heads equals
        # concat_h(ctx_h) @ Wo, so no concatenate is ever materialized.
        acc = acc + jnp.dot(ctx.reshape(batch * q_size, head_dim), wo_ref[h],
                            preferred_element_type=jnp.float32)

    out_ref[...] = (acc + bo_ref[...]).astype(out_ref.dtype)


def prepare_params(params, num_heads):
    """One-time parameter prep (hoisted out of the per-call path):
    transpose PyTorch (out,in) Linear weights to per-head (in,out) layouts and
    fold the 1/sqrt(head_dim) attention scale into the query projection."""
    H = params["query_w"].shape[0]
    hd = H // num_heads
    scale = 1.0 / math.sqrt(float(hd))

    # Rows h*hd:(h+1)*hd of an (out,in) weight produce head h's outputs.
    wq = (params["query_w"] * scale).reshape(num_heads, hd, H).transpose(0, 2, 1)  # (nh, H, hd)
    bq = (params["query_b"] * scale).reshape(num_heads, 1, hd)                     # (nh, 1, hd)
    wk = params["key_w"].reshape(num_heads, hd, H).transpose(0, 2, 1)              # (nh, H, hd)
    bk = params["key_b"].reshape(num_heads, 1, hd)                                 # (nh, 1, hd)
    # Final projection consumes ctx columns h*hd:(h+1)*hd -> split proj_w.T by rows.
    wo = params["proj_w"].T.reshape(num_heads, hd, H)                              # (nh, hd, H)
    bo = params["proj_b"].reshape(1, H)                                            # (1, H)
    # params["value_w"] / ["value_b"] exist in the module but are unused in forward.
    return {"wq": wq, "bq": bq, "wk": wk, "bk": bk, "wo": wo, "bo": bo}


def kw_multihead_attention(KV, Q, prep, num_heads):
    """KV: (B, KV_size, H), Q: (B, Q_size, H) -> (B, Q_size, H).
    `prep` comes from prepare_params() (call once, reuse across calls)."""
    B, KVs, H = KV.shape
    _, Qs, _ = Q.shape
    assert H % num_heads == 0
    head_dim = H // num_heads

    # Fold batch into the row dimension of the projections; single kernel
    # invocation, no grid (contiguous reshapes, no data movement).
    q2 = Q.reshape(B * Qs, H)
    kv2 = KV.reshape(B * KVs, H)

    kernel = partial(kw_attn_kernel, batch=B, q_size=Qs, kv_size=KVs,
                     num_heads=num_heads, head_dim=head_dim)

    # TODO(synk): optional additive attention_mask path not wired in (call uses mask=None).
    out2 = pl.pallas_call(
        kernel,
        out_shape=jax.ShapeDtypeStruct((B * Qs, H), Q.dtype),
    )(q2, kv2, prep["wq"], prep["bq"], prep["wk"], prep["bk"], prep["wo"], prep["bo"])
    return out2.reshape(B, Qs, H)


def reference_forward(KV, Q, params, num_heads):
    """Pure-JAX replica of the PyTorch forward (for verification)."""
    B, KVs, H = KV.shape
    _, Qs, _ = Q.shape
    hd = H // num_heads

    def lin(x, w, b):
        return x @ w.T + b

    Qp = lin(Q, params["query_w"], params["query_b"])
    Kp = lin(KV, params["key_w"], params["key_b"])
    Vp = Kp  # module quirk: V = self.key(KV)

    Qh = Qp.reshape(B, Qs, num_heads, hd).transpose(0, 2, 1, 3)
    Kh = Kp.reshape(B, KVs, num_heads, hd).transpose(0, 2, 1, 3)
    Vh = Vp.reshape(B, KVs, num_heads, hd).transpose(0, 2, 1, 3)

    scores = jnp.einsum("bhqd,bhkd->bhqk", Qh, Kh) / jnp.sqrt(jnp.float32(hd))
    w = jax.nn.softmax(scores, axis=-2)              # dim=-2 softmax (query axis)
    ctx = jnp.einsum("bhqk,bhkd->bhqd", w, Vh)
    ctx = ctx.transpose(0, 2, 1, 3).reshape(B, Qs, H)
    return lin(ctx, params["proj_w"], params["proj_b"])


def init_params(key, hidden_dim):
    """Deterministic PyTorch-style uniform(-1/sqrt(in), 1/sqrt(in)) init."""
    bound = 1.0 / math.sqrt(hidden_dim)
    names = ["query_w", "query_b", "key_w", "key_b",
             "value_w", "value_b", "proj_w", "proj_b"]
    keys = jax.random.split(key, len(names))
    params = {}
    for n, k in zip(names, keys):
        shape = (hidden_dim, hidden_dim) if n.endswith("_w") else (hidden_dim,)
        params[n] = jax.random.uniform(k, shape, jnp.float32, -bound, bound)
    return params


if __name__ == "__main__":
    # cus_config: attr_dim = 32, num_attr_heads = 4
    B, KV_size, Q_size, H, num_heads = 2, 16, 8, 32, 4

    root = jax.random.PRNGKey(0)
    k_kv, k_q, k_p = jax.random.split(root, 3)
    KV = jax.random.normal(k_kv, (B, KV_size, H), jnp.float32)
    Q = jax.random.normal(k_q, (B, Q_size, H), jnp.float32)
    params = init_params(k_p, H)

    prep = prepare_params(params, num_heads)          # one-time param prep
    out = kw_multihead_attention(KV, Q, prep, num_heads)
    out = jax.block_until_ready(out)

    ref = reference_forward(KV, Q, params, num_heads)
    assert out.shape == (B, Q_size, H)
    assert jnp.allclose(out, ref, atol=1e-5, rtol=1e-5), "mismatch vs reference"

    print("KERNEL_OK")
</pallas_src>

<mosaic_0001>
module attributes {stable_mosaic.version = 11 : i64} {
  func.func @kw_attn_kernel(%arg0: memref<16x32xf32, #tpu.memory_space<vmem>>, %arg1: memref<32x32xf32, #tpu.memory_space<vmem>>, %arg2: memref<4x32x8xf32, #tpu.memory_space<vmem>>, %arg3: memref<4x1x8xf32, #tpu.memory_space<vmem>>, %arg4: memref<4x32x8xf32, #tpu.memory_space<vmem>>, %arg5: memref<4x1x8xf32, #tpu.memory_space<vmem>>, %arg6: memref<4x8x32xf32, #tpu.memory_space<vmem>>, %arg7: memref<1x32xf32, #tpu.memory_space<vmem>>, %arg8: memref<16x32xf32, #tpu.memory_space<vmem>>) attributes {dimension_semantics = [], scalar_prefetch = 0 : i64, scratch_operands = 0 : i64, tpu.core_type = #tpu.core_type<tc>} {
    %c0 = arith.constant 0 : index
    %c0_0 = arith.constant 0 : index
    %0 = vector.load %arg0[%c0, %c0_0] : memref<16x32xf32, #tpu.memory_space<vmem>>, vector<16x32xf32>
    %c0_1 = arith.constant 0 : index
    %c0_2 = arith.constant 0 : index
    %1 = vector.load %arg1[%c0_1, %c0_2] : memref<32x32xf32, #tpu.memory_space<vmem>>, vector<32x32xf32>
    %cst = arith.constant 0.000000e+00 : f32
    %2 = vector.broadcast %cst : f32 to vector<16x32xf32>
    %c0_3 = arith.constant 0 : index
    %c0_4 = arith.constant 0 : index
    %c0_5 = arith.constant 0 : index
    %3 = vector.load %arg2[%c0_3, %c0_4, %c0_5] : memref<4x32x8xf32, #tpu.memory_space<vmem>>, vector<1x32x8xf32>
    %4 = vector.shape_cast %3 : vector<1x32x8xf32> to vector<32x8xf32>
    %cst_6 = arith.constant dense<0.000000e+00> : vector<16x8xf32>
    %5 = tpu.matmul %0, %4, %cst_6 {dimension_numbers = #tpu.dot_dimension_numbers<[1], [0], [0], [1], [0, 0, 1, 1], [], []>} : vector<16x32xf32>, vector<32x8xf32>, vector<16x8xf32> -> vector<16x8xf32>
    %c0_7 = arith.constant 0 : index
    %c0_8 = arith.constant 0 : index
    %c0_9 = arith.constant 0 : index
    %6 = vector.load %arg3[%c0_7, %c0_8, %c0_9] : memref<4x1x8xf32, #tpu.memory_space<vmem>>, vector<1x1x8xf32>
    %7 = vector.shape_cast %6 : vector<1x1x8xf32> to vector<1x8xf32>
    %8 = vector.broadcast %7 : vector<1x8xf32> to vector<16x8xf32>
    %9 = arith.addf %5, %8 : vector<16x8xf32>
    %c0_10 = arith.constant 0 : index
    %c0_11 = arith.constant 0 : index
    %c0_12 = arith.constant 0 : index
    %10 = vector.load %arg4[%c0_10, %c0_11, %c0_12] : memref<4x32x8xf32, #tpu.memory_space<vmem>>, vector<1x32x8xf32>
    %11 = vector.shape_cast %10 : vector<1x32x8xf32> to vector<32x8xf32>
    %cst_13 = arith.constant dense<0.000000e+00> : vector<32x8xf32>
    %12 = tpu.matmul %1, %11, %cst_13 {dimension_numbers = #tpu.dot_dimension_numbers<[1], [0], [0], [1], [0, 0, 1, 1], [], []>} : vector<32x32xf32>, vector<32x8xf32>, vector<32x8xf32> -> vector<32x8xf32>
    %c0_14 = arith.constant 0 : index
    %c0_15 = arith.constant 0 : index
    %c0_16 = arith.constant 0 : index
    %13 = vector.load %arg5[%c0_14, %c0_15, %c0_16] : memref<4x1x8xf32, #tpu.memory_space<vmem>>, vector<1x1x8xf32>
    %14 = vector.shape_cast %13 : vector<1x1x8xf32> to vector<1x8xf32>
    %15 = vector.broadcast %14 : vector<1x8xf32> to vector<32x8xf32>
    %16 = arith.addf %12, %15 : vector<32x8xf32>
    %17 = vector.shape_cast %9 : vector<16x8xf32> to vector<2x8x8xf32>
    %18 = vector.shape_cast %16 : vector<32x8xf32> to vector<2x16x8xf32>
    "tpu.trace_start"() <{level = 10 : i32, message = "bqd,bkd->bqk"}> : () -> ()
    %cst_17 = arith.constant dense<0.000000e+00> : vector<2x8x16xf32>
    %19 = tpu.matmul %17, %18, %cst_17 {dimension_numbers = #tpu.dot_dimension_numbers<[2], [2], [1], [1], [0, 0, 0, 1, 1, 1], [0], [0]>} : vector<2x8x8xf32>, vector<2x16x8xf32>, vector<2x8x16xf32> -> vector<2x8x16xf32>
    "tpu.trace_stop"() : () -> ()
    %cst_18 = arith.constant dense<0xFF800000> : vector<2x16xf32>
    %20 = vector.multi_reduction <maximumf>, %19, %cst_18 [1] : vector<2x8x16xf32> to vector<2x16xf32>
    %21 = vector.shape_cast %20 : vector<2x16xf32> to vector<2x1x16xf32>
    %22 = vector.broadcast %21 : vector<2x1x16xf32> to vector<2x8x16xf32>
    %23 = arith.subf %19, %22 : vector<2x8x16xf32>
    %24 = math.exp %23 : vector<2x8x16xf32>
    %cst_19 = arith.constant dense<0.000000e+00> : vector<2x16xf32>
    %25 = vector.multi_reduction <add>, %24, %cst_19 [1] : vector<2x8x16xf32> to vector<2x16xf32>
    %26 = vector.shape_cast %25 : vector<2x16xf32> to vector<2x1x16xf32>
    %27 = tpu.reciprocal %26 : vector<2x1x16xf32> -> vector<2x1x16xf32>
    %28 = vector.broadcast %27 : vector<2x1x16xf32> to vector<2x8x16xf32>
    %29 = arith.mulf %24, %28 : vector<2x8x16xf32>
    "tpu.trace_start"() <{level = 10 : i32, message = "bqk,bkd->bqd"}> : () -> ()
    %cst_20 = arith.constant dense<0.000000e+00> : vector<2x8x8xf32>
    %30 = tpu.matmul %29, %18, %cst_20 {dimension_numbers = #tpu.dot_dimension_numbers<[2], [1], [1], [2], [0, 0, 0, 1, 1, 2], [0], [0]>} : vector<2x8x16xf32>, vector<2x16x8xf32>, vector<2x8x8xf32> -> vector<2x8x8xf32>
    "tpu.trace_stop"() : () -> ()
    %31 = vector.shape_cast %30 : vector<2x8x8xf32> to vector<16x8xf32>
    %c0_21 = arith.constant 0 : index
    %c0_22 = arith.constant 0 : index
    %c0_23 = arith.constant 0 : index
    %32 = vector.load %arg6[%c0_21, %c0_22, %c0_23] : memref<4x8x32xf32, #tpu.memory_space<vmem>>, vector<1x8x32xf32>
    %33 = vector.shape_cast %32 : vector<1x8x32xf32> to vector<8x32xf32>
    %cst_24 = arith.constant dense<0.000000e+00> : vector<16x32xf32>
    %34 = tpu.matmul %31, %33, %cst_24 {dimension_numbers = #tpu.dot_dimension_numbers<[1], [0], [0], [1], [0, 0, 1, 1], [], []>} : vector<16x8xf32>, vector<8x32xf32>, vector<16x32xf32> -> vector<16x32xf32>
    %35 = arith.addf %2, %34 : vector<16x32xf32>
    %c1 = arith.constant 1 : index
    %c0_25 = arith.constant 0 : index
    %c0_26 = arith.constant 0 : index
    %36 = vector.load %arg2[%c1, %c0_25, %c0_26] : memref<4x32x8xf32, #tpu.memory_space<vmem>>, vector<1x32x8xf32>
    %37 = vector.shape_cast %36 : vector<1x32x8xf32> to vector<32x8xf32>
    %cst_27 = arith.constant dense<0.000000e+00> : vector<16x8xf32>
    %38 = tpu.matmul %0, %37, %cst_27 {dimension_numbers = #tpu.dot_dimension_numbers<[1], [0], [0], [1], [0, 0, 1, 1], [], []>} : vector<16x32xf32>, vector<32x8xf32>, vector<16x8xf32> -> vector<16x8xf32>
    %c1_28 = arith.constant 1 : index
    %c0_29 = arith.constant 0 : index
    %c0_30 = arith.constant 0 : index
    %39 = vector.load %arg3[%c1_28, %c0_29, %c0_30] : memref<4x1x8xf32, #tpu.memory_space<vmem>>, vector<1x1x8xf32>
    %40 = vector.shape_cast %39 : vector<1x1x8xf32> to vector<1x8xf32>
    %41 = vector.broadcast %40 : vector<1x8xf32> to vector<16x8xf32>
    %42 = arith.addf %38, %41 : vector<16x8xf32>
    %c1_31 = arith.constant 1 : index
    %c0_32 = arith.constant 0 : index
    %c0_33 = arith.constant 0 : index
    %43 = vector.load %arg4[%c1_31, %c0_32, %c0_33] : memref<4x32x8xf32, #tpu.memory_space<vmem>>, vector<1x32x8xf32>
    %44 = vector.shape_cast %43 : vector<1x32x8xf32> to vector<32x8xf32>
    %cst_34 = arith.constant dense<0.000000e+00> : vector<32x8xf32>
    %45 = tpu.matmul %1, %44, %cst_34 {dimension_numbers = #tpu.dot_dimension_numbers<[1], [0], [0], [1], [0, 0, 1, 1], [], []>} : vector<32x32xf32>, vector<32x8xf32>, vector<32x8xf32> -> vector<32x8xf32>
    %c1_35 = arith.constant 1 : index
    %c0_36 = arith.constant 0 : index
    %c0_37 = arith.constant 0 : index
    %46 = vector.load %arg5[%c1_35, %c0_36, %c0_37] : memref<4x1x8xf32, #tpu.memory_space<vmem>>, vector<1x1x8xf32>
    %47 = vector.shape_cast %46 : vector<1x1x8xf32> to vector<1x8xf32>
    %48 = vector.broadcast %47 : vector<1x8xf32> to vector<32x8xf32>
    %49 = arith.addf %45, %48 : vector<32x8xf32>
    %50 = vector.shape_cast %42 : vector<16x8xf32> to vector<2x8x8xf32>
    %51 = vector.shape_cast %49 : vector<32x8xf32> to vector<2x16x8xf32>
    "tpu.trace_start"() <{level = 10 : i32, message = "bqd,bkd->bqk"}> : () -> ()
    %cst_38 = arith.constant dense<0.000000e+00> : vector<2x8x16xf32>
    %52 = tpu.matmul %50, %51, %cst_38 {dimension_numbers = #tpu.dot_dimension_numbers<[2], [2], [1], [1], [0, 0, 0, 1, 1, 1], [0], [0]>} : vector<2x8x8xf32>, vector<2x16x8xf32>, vector<2x8x16xf32> -> vector<2x8x16xf32>
    "tpu.trace_stop"() : () -> ()
    %cst_39 = arith.constant dense<0xFF800000> : vector<2x16xf32>
    %53 = vector.multi_reduction <maximumf>, %52, %cst_39 [1] : vector<2x8x16xf32> to vector<2x16xf32>
    %54 = vector.shape_cast %53 : vector<2x16xf32> to vector<2x1x16xf32>
    %55 = vector.broadcast %54 : vector<2x1x16xf32> to vector<2x8x16xf32>
    %56 = arith.subf %52, %55 : vector<2x8x16xf32>
    %57 = math.exp %56 : vector<2x8x16xf32>
    %cst_40 = arith.constant dense<0.000000e+00> : vector<2x16xf32>
    %58 = vector.multi_reduction <add>, %57, %cst_40 [1] : vector<2x8x16xf32> to vector<2x16xf32>
    %59 = vector.shape_cast %58 : vector<2x16xf32> to vector<2x1x16xf32>
    %60 = tpu.reciprocal %59 : vector<2x1x16xf32> -> vector<2x1x16xf32>
    %61 = vector.broadcast %60 : vector<2x1x16xf32> to vector<2x8x16xf32>
    %62 = arith.mulf %57, %61 : vector<2x8x16xf32>
    "tpu.trace_start"() <{level = 10 : i32, message = "bqk,bkd->bqd"}> : () -> ()
    %cst_41 = arith.constant dense<0.000000e+00> : vector<2x8x8xf32>
    %63 = tpu.matmul %62, %51, %cst_41 {dimension_numbers = #tpu.dot_dimension_numbers<[2], [1], [1], [2], [0, 0, 0, 1, 1, 2], [0], [0]>} : vector<2x8x16xf32>, vector<2x16x8xf32>, vector<2x8x8xf32> -> vector<2x8x8xf32>
    "tpu.trace_stop"() : () -> ()
    %64 = vector.shape_cast %63 : vector<2x8x8xf32> to vector<16x8xf32>
    %c1_42 = arith.constant 1 : index
    %c0_43 = arith.constant 0 : index
    %c0_44 = arith.constant 0 : index
    %65 = vector.load %arg6[%c1_42, %c0_43, %c0_44] : memref<4x8x32xf32, #tpu.memory_space<vmem>>, vector<1x8x32xf32>
    %66 = vector.shape_cast %65 : vector<1x8x32xf32> to vector<8x32xf32>
    %cst_45 = arith.constant dense<0.000000e+00> : vector<16x32xf32>
    %67 = tpu.matmul %64, %66, %cst_45 {dimension_numbers = #tpu.dot_dimension_numbers<[1], [0], [0], [1], [0, 0, 1, 1], [], []>} : vector<16x8xf32>, vector<8x32xf32>, vector<16x32xf32> -> vector<16x32xf32>
    %68 = arith.addf %35, %67 : vector<16x32xf32>
    %c2 = arith.constant 2 : index
    %c0_46 = arith.constant 0 : index
    %c0_47 = arith.constant 0 : index
    %69 = vector.load %arg2[%c2, %c0_46, %c0_47] : memref<4x32x8xf32, #tpu.memory_space<vmem>>, vector<1x32x8xf32>
    %70 = vector.shape_cast %69 : vector<1x32x8xf32> to vector<32x8xf32>
    %cst_48 = arith.constant dense<0.000000e+00> : vector<16x8xf32>
    %71 = tpu.matmul %0, %70, %cst_48 {dimension_numbers = #tpu.dot_dimension_numbers<[1], [0], [0], [1], [0, 0, 1, 1], [], []>} : vector<16x32xf32>, vector<32x8xf32>, vector<16x8xf32> -> vector<16x8xf32>
    %c2_49 = arith.constant 2 : index
    %c0_50 = arith.constant 0 : index
    %c0_51 = arith.constant 0 : index
    %72 = vector.load %arg3[%c2_49, %c0_50, %c0_51] : memref<4x1x8xf32, #tpu.memory_space<vmem>>, vector<1x1x8xf32>
    %73 = vector.shape_cast %72 : vector<1x1x8xf32> to vector<1x8xf32>
    %74 = vector.broadcast %73 : vector<1x8xf32> to vector<16x8xf32>
    %75 = arith.addf %71, %74 : vector<16x8xf32>
    %c2_52 = arith.constant 2 : index
    %c0_53 = arith.constant 0 : index
    %c0_54 = arith.constant 0 : index
    %76 = vector.load %arg4[%c2_52, %c0_53, %c0_54] : memref<4x32x8xf32, #tpu.memory_space<vmem>>, vector<1x32x8xf32>
    %77 = vector.shape_cast %76 : vector<1x32x8xf32> to vector<32x8xf32>
    %cst_55 = arith.constant dense<0.000000e+00> : vector<32x8xf32>
    %78 = tpu.matmul %1, %77, %cst_55 {dimension_numbers = #tpu.dot_dimension_numbers<[1], [0], [0], [1], [0, 0, 1, 1], [], []>} : vector<32x32xf32>, vector<32x8xf32>, vector<32x8xf32> -> vector<32x8xf32>
    %c2_56 = arith.constant 2 : index
    %c0_57 = arith.constant 0 : index
    %c0_58 = arith.constant 0 : index
    %79 = vector.load %arg5[%c2_56, %c0_57, %c0_58] : memref<4x1x8xf32, #tpu.memory_space<vmem>>, vector<1x1x8xf32>
    %80 = vector.shape_cast %79 : vector<1x1x8xf32> to vector<1x8xf32>
    %81 = vector.broadcast %80 : vector<1x8xf32> to vector<32x8xf32>
    %82 = arith.addf %78, %81 : vector<32x8xf32>
    %83 = vector.shape_cast %75 : vector<16x8xf32> to vector<2x8x8xf32>
    %84 = vector.shape_cast %82 : vector<32x8xf32> to vector<2x16x8xf32>
    "tpu.trace_start"() <{level = 10 : i32, message = "bqd,bkd->bqk"}> : () -> ()
    %cst_59 = arith.constant dense<0.000000e+00> : vector<2x8x16xf32>
    %85 = tpu.matmul %83, %84, %cst_59 {dimension_numbers = #tpu.dot_dimension_numbers<[2], [2], [1], [1], [0, 0, 0, 1, 1, 1], [0], [0]>} : vector<2x8x8xf32>, vector<2x16x8xf32>, vector<2x8x16xf32> -> vector<2x8x16xf32>
    "tpu.trace_stop"() : () -> ()
    %cst_60 = arith.constant dense<0xFF800000> : vector<2x16xf32>
    %86 = vector.multi_reduction <maximumf>, %85, %cst_60 [1] : vector<2x8x16xf32> to vector<2x16xf32>
    %87 = vector.shape_cast %86 : vector<2x16xf32> to vector<2x1x16xf32>
    %88 = vector.broadcast %87 : vector<2x1x16xf32> to vector<2x8x16xf32>
    %89 = arith.subf %85, %88 : vector<2x8x16xf32>
    %90 = math.exp %89 : vector<2x8x16xf32>
    %cst_61 = arith.constant dense<0.000000e+00> : vector<2x16xf32>
    %91 = vector.multi_reduction <add>, %90, %cst_61 [1] : vector<2x8x16xf32> to vector<2x16xf32>
    %92 = vector.shape_cast %91 : vector<2x16xf32> to vector<2x1x16xf32>
    %93 = tpu.reciprocal %92 : vector<2x1x16xf32> -> vector<2x1x16xf32>
    %94 = vector.broadcast %93 : vector<2x1x16xf32> to vector<2x8x16xf32>
    %95 = arith.mulf %90, %94 : vector<2x8x16xf32>
    "tpu.trace_start"() <{level = 10 : i32, message = "bqk,bkd->bqd"}> : () -> ()
    %cst_62 = arith.constant dense<0.000000e+00> : vector<2x8x8xf32>
    %96 = tpu.matmul %95, %84, %cst_62 {dimension_numbers = #tpu.dot_dimension_numbers<[2], [1], [1], [2], [0, 0, 0, 1, 1, 2], [0], [0]>} : vector<2x8x16xf32>, vector<2x16x8xf32>, vector<2x8x8xf32> -> vector<2x8x8xf32>
    "tpu.trace_stop"() : () -> ()
    %97 = vector.shape_cast %96 : vector<2x8x8xf32> to vector<16x8xf32>
    %c2_63 = arith.constant 2 : index
    %c0_64 = arith.constant 0 : index
    %c0_65 = arith.constant 0 : index
    %98 = vector.load %arg6[%c2_63, %c0_64, %c0_65] : memref<4x8x32xf32, #tpu.memory_space<vmem>>, vector<1x8x32xf32>
    %99 = vector.shape_cast %98 : vector<1x8x32xf32> to vector<8x32xf32>
    %cst_66 = arith.constant dense<0.000000e+00> : vector<16x32xf32>
    %100 = tpu.matmul %97, %99, %cst_66 {dimension_numbers = #tpu.dot_dimension_numbers<[1], [0], [0], [1], [0, 0, 1, 1], [], []>} : vector<16x8xf32>, vector<8x32xf32>, vector<16x32xf32> -> vector<16x32xf32>
    %101 = arith.addf %68, %100 : vector<16x32xf32>
    %c3 = arith.constant 3 : index
    %c0_67 = arith.constant 0 : index
    %c0_68 = arith.constant 0 : index
    %102 = vector.load %arg2[%c3, %c0_67, %c0_68] : memref<4x32x8xf32, #tpu.memory_space<vmem>>, vector<1x32x8xf32>
    %103 = vector.shape_cast %102 : vector<1x32x8xf32> to vector<32x8xf32>
    %cst_69 = arith.constant dense<0.000000e+00> : vector<16x8xf32>
    %104 = tpu.matmul %0, %103, %cst_69 {dimension_numbers = #tpu.dot_dimension_numbers<[1], [0], [0], [1], [0, 0, 1, 1], [], []>} : vector<16x32xf32>, vector<32x8xf32>, vector<16x8xf32> -> vector<16x8xf32>
    %c3_70 = arith.constant 3 : index
    %c0_71 = arith.constant 0 : index
    %c0_72 = arith.constant 0 : index
    %105 = vector.load %arg3[%c3_70, %c0_71, %c0_72] : memref<4x1x8xf32, #tpu.memory_space<vmem>>, vector<1x1x8xf32>
    %106 = vector.shape_cast %105 : vector<1x1x8xf32> to vector<1x8xf32>
    %107 = vector.broadcast %106 : vector<1x8xf32> to vector<16x8xf32>
    %108 = arith.addf %104, %107 : vector<16x8xf32>
    %c3_73 = arith.constant 3 : index
    %c0_74 = arith.constant 0 : index
    %c0_75 = arith.constant 0 : index
    %109 = vector.load %arg4[%c3_73, %c0_74, %c0_75] : memref<4x32x8xf32, #tpu.memory_space<vmem>>, vector<1x32x8xf32>
    %110 = vector.shape_cast %109 : vector<1x32x8xf32> to vector<32x8xf32>
    %cst_76 = arith.constant dense<0.000000e+00> : vector<32x8xf32>
    %111 = tpu.matmul %1, %110, %cst_76 {dimension_numbers = #tpu.dot_dimension_numbers<[1], [0], [0], [1], [0, 0, 1, 1], [], []>} : vector<32x32xf32>, vector<32x8xf32>, vector<32x8xf32> -> vector<32x8xf32>
    %c3_77 = arith.constant 3 : index
    %c0_78 = arith.constant 0 : index
    %c0_79 = arith.constant 0 : index
    %112 = vector.load %arg5[%c3_77, %c0_78, %c0_79] : memref<4x1x8xf32, #tpu.memory_space<vmem>>, vector<1x1x8xf32>
    %113 = vector.shape_cast %112 : vector<1x1x8xf32> to vector<1x8xf32>
    %114 = vector.broadcast %113 : vector<1x8xf32> to vector<32x8xf32>
    %115 = arith.addf %111, %114 : vector<32x8xf32>
    %116 = vector.shape_cast %108 : vector<16x8xf32> to vector<2x8x8xf32>
    %117 = vector.shape_cast %115 : vector<32x8xf32> to vector<2x16x8xf32>
    "tpu.trace_start"() <{level = 10 : i32, message = "bqd,bkd->bqk"}> : () -> ()
    %cst_80 = arith.constant dense<0.000000e+00> : vector<2x8x16xf32>
    %118 = tpu.matmul %116, %117, %cst_80 {dimension_numbers = #tpu.dot_dimension_numbers<[2], [2], [1], [1], [0, 0, 0, 1, 1, 1], [0], [0]>} : vector<2x8x8xf32>, vector<2x16x8xf32>, vector<2x8x16xf32> -> vector<2x8x16xf32>
    "tpu.trace_stop"() : () -> ()
    %cst_81 = arith.constant dense<0xFF800000> : vector<2x16xf32>
    %119 = vector.multi_reduction <maximumf>, %118, %cst_81 [1] : vector<2x8x16xf32> to vector<2x16xf32>
    %120 = vector.shape_cast %119 : vector<2x16xf32> to vector<2x1x16xf32>
    %121 = vector.broadcast %120 : vector<2x1x16xf32> to vector<2x8x16xf32>
    %122 = arith.subf %118, %121 : vector<2x8x16xf32>
    %123 = math.exp %122 : vector<2x8x16xf32>
    %cst_82 = arith.constant dense<0.000000e+00> : vector<2x16xf32>
    %124 = vector.multi_reduction <add>, %123, %cst_82 [1] : vector<2x8x16xf32> to vector<2x16xf32>
    %125 = vector.shape_cast %124 : vector<2x16xf32> to vector<2x1x16xf32>
    %126 = tpu.reciprocal %125 : vector<2x1x16xf32> -> vector<2x1x16xf32>
    %127 = vector.broadcast %126 : vector<2x1x16xf32> to vector<2x8x16xf32>
    %128 = arith.mulf %123, %127 : vector<2x8x16xf32>
    "tpu.trace_start"() <{level = 10 : i32, message = "bqk,bkd->bqd"}> : () -> ()
    %cst_83 = arith.constant dense<0.000000e+00> : vector<2x8x8xf32>
    %129 = tpu.matmul %128, %117, %cst_83 {dimension_numbers = #tpu.dot_dimension_numbers<[2], [1], [1], [2], [0, 0, 0, 1, 1, 2], [0], [0]>} : vector<2x8x16xf32>, vector<2x16x8xf32>, vector<2x8x8xf32> -> vector<2x8x8xf32>
    "tpu.trace_stop"() : () -> ()
    %130 = vector.shape_cast %129 : vector<2x8x8xf32> to vector<16x8xf32>
    %c3_84 = arith.constant 3 : index
    %c0_85 = arith.constant 0 : index
    %c0_86 = arith.constant 0 : index
    %131 = vector.load %arg6[%c3_84, %c0_85, %c0_86] : memref<4x8x32xf32, #tpu.memory_space<vmem>>, vector<1x8x32xf32>
    %132 = vector.shape_cast %131 : vector<1x8x32xf32> to vector<8x32xf32>
    %cst_87 = arith.constant dense<0.000000e+00> : vector<16x32xf32>
    %133 = tpu.matmul %130, %132, %cst_87 {dimension_numbers = #tpu.dot_dimension_numbers<[1], [0], [0], [1], [0, 0, 1, 1], [], []>} : vector<16x8xf32>, vector<8x32xf32>, vector<16x32xf32> -> vector<16x32xf32>
    %134 = arith.addf %101, %133 : vector<16x32xf32>
    %c0_88 = arith.constant 0 : index
    %c0_89 = arith.constant 0 : index
    %135 = vector.load %arg7[%c0_88, %c0_89] : memref<1x32xf32, #tpu.memory_space<vmem>>, vector<1x32xf32>
    %136 = vector.broadcast %135 : vector<1x32xf32> to vector<16x32xf32>
    %137 = arith.addf %134, %136 : vector<16x32xf32>
    %c0_90 = arith.constant 0 : index
    %c0_91 = arith.constant 0 : index
    %138 = vector.load %arg8[%c0_90, %c0_91] : memref<16x32xf32, #tpu.memory_space<vmem>>, vector<16x32xf32>
    tpu.vector_store %arg8[%c0_90, %c0_91], %137 {strides = array<i32>} : memref<16x32xf32, #tpu.memory_space<vmem>>, vector<16x32xf32>,
    return
  }
}

</mosaic_0001>

<bundles_post_ra>
// kernel: tpu_custom_call.1
= control target key start
LH: loop header
LB: loop body
LE: loop exit
PB: predicated region body
PF: predicated region fallthrough
CT: control target
= control target key end

     0   :  { %vm47_vm0 = vcmask 261120   ;;  %s3452_s0 = inlined_call_operand.vmem [shape: f32[16,32], index: 0, kind: input, shape index: {}]   ;;  %s3453_s1 = inlined_call_operand.vmem [shape: f32[32,32], index: 1, kind: input, shape index: {}]   ;;  %s3454_s2 = inlined_call_operand.vmem [shape: f32[4,32,8], index: 2, kind: input, shape index: {}]   ;;  %s3455_s3 = inlined_call_operand.vmem [shape: f32[4,1,8], index: 3, kind: input, shape index: {}]   ;;  %s3456_s4 = inlined_call_operand.vmem [shape: f32[4,32,8], index: 4, kind: input, shape index: {}]   ;;  %s3457_s5 = inlined_call_operand.vmem [shape: f32[4,1,8], index: 5, kind: input, shape index: {}]   ;;  %s3458_s6 = inlined_call_operand.vmem [shape: f32[4,8,32], index: 6, kind: input, shape index: {}]   ;;  %s3459_s7 = inlined_call_operand.vmem [shape: f32[1,32], index: 7, kind: input, shape index: {}]   ;;  %s3460_s8 = inlined_call_operand.hbm [shape: f32[16,32], index: 8, kind: output, shape index: {}]  }
   0x1   :  { %v132_v0 = vld [vmem:[%s3456_s4 + $0x18] sm:$0xff]  ;;  %v131_v1 = vld [vmem:[%s3456_s4 + $0x10] sm:$0xff]  ;;  %v130_v4 = vld [vmem:[%s3456_s4 + $0x8] sm:$0xff] }
   0x2   :  { %2760 = vmatprep.subr.mxu1 %v132_v0  ;;  %v39_v2 = vld [vmem:[%s3454_s2 + $0x18] sm:$0xff]  ;;  %v38_v3 = vld [vmem:[%s3454_s2 + $0x10] sm:$0xff]  ;;  %v3108_v5 = vld [vmem:[%s3453_s1] sm:$0xff] }
   0x3   :  { %2761 = vmatpush3.msra.mxu1 %v132_v0  ;;  %2749 = vmatprep.subr.mxu0 %v39_v2  ;;  %v129_v6 = vld [vmem:[%s3456_s4] sm:$0xff]  ;;  %v37_v7 = vld [vmem:[%s3454_s2 + $0x8] sm:$0xff] }
   0x4   :  { %2762 = vmatprep.subr.mxu1 %v131_v1  ;;  %2750 = vmatpush3.msra.mxu0 %v39_v2 }
   0x5   :  { %2763 = vmatpush3.msra.mxu1 %v131_v1  ;;  %2751 = vmatprep.subr.mxu0 %v38_v3 }
   0x6   :  { %13 = vsyncpa [#allocation3], 0  ;;  %2764 = vmatprep.subr.mxu1 %v130_v4  ;;  %2768 = vmatprep.mubr.msk.f32.mxu1 %vm47_vm0, %v3108_v5  ;;  %v3121_v8 = vld [vmem:[%s3453_s1 + $0x8] sm:$0xff]  ;;  %v36_v9 = vld [vmem:[%s3454_s2] sm:$0xff]  ;;  %v3040_v14 = vmov 0.0   ;;  %vm3041_vm1 = vmmov 0  }
   0x7   :  { %2765 = vmatpush3.msra.mxu1 %v130_v4  ;;  %2752 = vmatpush3.msra.mxu0 %v38_v3  ;;  %v3129_v10 = vld [vmem:[%s3453_s1 + $0x10] sm:$0xff]  ;;  %v3134_v11 = vld [vmem:[%s3452_s0] sm:$0xff]  ;;  %v3141_v12 = vld [vmem:[%s3452_s0 + $0x8] sm:$0xff]  ;;  %vm237_vm2 = vcmask 64512   ;;  %vm396_vm3 = vcmask 130048   ;;  %s3042_s9 = smov [#allocation2]  }
   0x8   :  { %2766 = vmatprep.subr.mxu1 %v129_v6  ;;  %2753 = vmatprep.subr.mxu0 %v37_v7  ;;  %v3148_v13 = vld [vmem:[%s3453_s1 + $0x18] sm:$0xff]  ;;  %v2530_v15 = vld [vmem:[%s3457_s5] ss:$0 sm:$0xff]  ;;  %s2516_s10 = sshll.u32 %s3042_s9, 4  ;;  %s2517_s10 = int_to_ptr.vmem [resolvable:$true] %s2516_s10 }
   0x9   :  { %2767 = vmatpush3.msra.mxu1 %v129_v6  ;;  %2754 = vmatpush3.msra.mxu0 %v37_v7  ;;  %v2527_v20 = vld [vmem:[%s3455_s3] ss:$0 sm:$0xff]  ;;  %v2554_v29 = vld [vmem:[%s3456_s4 + $0x38] sm:$0xff]  ;;  %p3023_p1 = scmp.lt.s32.totalorder %s2517_s10, %s2517_s10 }
   0xa   :  { %2769 = vmatmul.mubr.msk.f32.vlgmr.msra.gmra.mxu1 %vm47_vm0, %v3121_v8  ;;  %2755 = vmatprep.subr.mxu0 %v36_v9  ;;  %v2546_v30 = vld [vmem:[%s3454_s2 + $0x38] sm:$0xff] }
   0xb   :  { %2771 = vmatprep.mubr.msk.f32.mxu1 %vm47_vm0, %v3129_v10  ;;  %2756 = vmatpush3.msra.mxu0 %v36_v9  ;;  %v2545_v9 = vld [vmem:[%s3454_s2 + $0x30] sm:$0xff] }
   0xc   :  { %2757 = vmatprep.mubr.msk.f32.mxu0 %vm47_vm0, %v3134_v11  ;;  %2774 = vmatprep.subr.mxu0 %v3040_v14 }
   0xd   :  { %2758 = vmatmul.mubr.msk.f32.vlgmr.msra.gmra.mxu0 %vm47_vm0, %v3141_v12  ;;  %2781 = vmatprep.subr.mxu1 %v3040_v14 }
   0xe   :  { %2772 = vmatmul.mubr.msk.f32.gmra.mxu1 %vm47_vm0, %v3148_v13  ;;  %2778 = vmatprep.mubr.msk.f32.mxu0 %vm3041_vm1, %v3040_v14 }
   0xf   :  { %2785 = vmatprep.mubr.msk.f32.mxu1 %vm3041_vm1, %v3040_v14 }
  0xca   :  { %v2770_v16 = vpop.f32.mrf.mxu1 }
  0xcb   :  { %v224_v17 = vadd.f32 %v2770_v16, %v2530_v15  ;;  %v2544_v16 = vld [vmem:[%s3454_s2 + $0x28] sm:$0xff] }
  0xcc   :  { %v218_v18 = vpop.f32.mrf.mxu1 }
  0xcd   :  { %2775 = vmatpush3.xpose.msk.msra.mxu0 %vm237_vm2, %v224_v17  ;;  %v2759_v19 = vpop.f32.mrf.mxu0  ;;  %v219_v22 = vadd.f32 %v2530_v15, %v218_v18  ;;  %v2553_v18 = vld [vmem:[%s3456_s4 + $0x30] sm:$0xff] }
  0xce   :  { %v2773_v21 = vpop.f32.mrf.mxu1  ;;  %2776 = vmatprep.subr.mxu0 %v3040_v14  ;;  %v126_v28 = vadd.f32 %v2759_v19, %v2527_v20  ;;  %v2543_v19 = vld [vmem:[%s3454_s2 + $0x20] sm:$0xff] }
  0xcf   :  { %v234_v23 = vadd.f32 %v2773_v21, %v2530_v15  ;;  %v120_v24 = vpop.f32.mrf.mxu0  ;;  %v2551_v21 = vld [vmem:[%s3456_s4 + $0x20] sm:$0xff] }
  0xd0   :  { %v228_v25 = vpop.f32.mrf.mxu1  ;;  %v121_v26 = vadd.f32 %v2527_v20, %v120_v24  ;;  %v2552_v20 = vld [vmem:[%s3456_s4 + $0x28] sm:$0xff] }
  0xd1   :  { %2777 = vmatpush3.xpose.msk.msra.mxu0 %vm237_vm2, %v219_v22  ;;  %2782 = vmatpush3.xpose.msk.msra.mxu1 %vm237_vm2, %v234_v23  ;;  %v229_v27 = vadd.f32 %v2530_v15, %v228_v25 }
  0xd2   :  { %2783 = vmatprep.subr.mxu1 %v3040_v14  ;;  %2788 = vmatprep.subr.mxu0 %v3040_v14 }
  0xd4   :  { %2779 = vmatmul.mubr.msk.f32.vlgmr.msra.gmra.mxu0 %vm237_vm2, %v121_v26  ;;  %v2556_v26 = vld [vmem:[%s3457_s5 + $0x1] ss:$0 sm:$0xff] }
  0xd5   :  { %2784 = vmatpush3.xpose.msk.msra.mxu1 %vm237_vm2, %v229_v27  ;;  %2789 = vmatpush3.msra.mxu0 %v224_v17 }
  0xd6   :  { %2790 = vmatprep.subr.mxu0 %v3040_v14  ;;  %2795 = vmatprep.subr.mxu1 %v3040_v14 }
  0xd7   :  { %2791 = vmatpush3.msra.mxu0 %v219_v22  ;;  %2792 = vmatprep.mubr.msk.f32.mxu0 %vm3041_vm1, %v3040_v14 }
  0xd8   :  { %2786 = vmatmul.mubr.msk.f32.vlgmr.msra.gmra.mxu1 %vm237_vm2, %v126_v28  ;;  %2802 = vmatprep.subr.mxu0 %v2546_v30 }
  0xd9   :  { %2796 = vmatpush3.msra.mxu1 %v234_v23  ;;  %2799 = vmatprep.mubr.msk.f32.mxu1 %vm3041_vm1, %v3040_v14 }
  0xda   :  { %2797 = vmatprep.subr.mxu1 %v3040_v14 }
  0xdb   :  { %2798 = vmatpush3.msra.mxu1 %v229_v27 }
  0xdc   :  { %2813 = vmatprep.subr.mxu1 %v2554_v29 }
 0x194   :  { %v313_v31 = vpop.f32.mrf.mxu0 }
 0x195   :  { %v397_v32 = vsel %vm396_vm3, %v313_v31, -inf }
 0x196   :  { %v398_v33 = vrot.slane %v397_v32, 4  ;;  %v2780_v34 = vpop.f32.mrf.mxu0 }
 0x198   :  { %v399_v35 = vmax.f32 %v397_v32, %v398_v33  ;;  %v392_v36 = vpop.f32.mrf.mxu1 }
 0x199   :  { %v404_v37 = vsel %vm396_vm3, %v392_v36, -inf }
 0x19a   :  { %v400_v38 = vrot.slane %v399_v35, 2  ;;  %v405_v39 = vrot.slane %v404_v37, 4  ;;  %v2787_v40 = vpop.f32.mrf.mxu1 }
 0x19b   :  { %v581_v40 = vld [vmem:[%s3458_s6] sm:$0xff] }
 0x19c   :  { %v401_v41 = vmax.f32 %v399_v35, %v400_v38  ;;  %v406_v42 = vmax.f32 %v404_v37, %v405_v39 }
 0x19e   :  { %v402_v43 = vrot.slane %v401_v41, 1  ;;  %v407_v44 = vrot.slane %v406_v42, 2 }
 0x1a0   :  { %v403_v45 = vmax.f32 %v401_v41, %v402_v43  ;;  %v408_v46 = vmax.f32 %v406_v42, %v407_v44 }
 0x1a2   :  { %v411_v47 = vsub.f32 %v313_v31, %v403_v45  ;;  %v409_v48 = vrot.slane %v408_v46, 1  ;;  %v2548_v31 = vld [vmem:[%s3455_s3 + $0x1] ss:$0 sm:$0xff] }
 0x1a4   :  { %v413_v49 = vmul.f32 1.442695, %v411_v47  ;;  %v410_v50 = vmax.f32 %v408_v46, %v409_v48 }
 0x1a6   :  { %2986 = vpow2.f32 %v413_v49  ;;  %v412_v51 = vsub.f32 %v392_v36, %v410_v50 }
 0x1a8   :  { %v415_v52 = vmul.f32 1.442695, %v412_v51 }
 0x1aa   :  { %2988 = vpow2.f32 %v415_v52 }
 0x1b3   :  { %v2987_v53 = vpop.eup %2986 }
 0x1b4   :  { %v417_v54 = vsel %vm396_vm3, %v2987_v53, 0.0 }
 0x1b5   :  { %v418_v55 = vrot.slane %v417_v54, 4 }
 0x1b7   :  { %v2989_v56 = vpop.eup %2988  ;;  %v419_v57 = vadd.f32 %v418_v55, %v417_v54 }
 0x1b8   :  { %v424_v58 = vsel %vm396_vm3, %v2989_v56, 0.0 }
 0x1b9   :  { %v420_v59 = vrot.slane %v419_v57, 2  ;;  %v425_v60 = vrot.slane %v424_v58, 4 }
 0x1bb   :  { %v421_v61 = vadd.f32 %v420_v59, %v419_v57  ;;  %v426_v62 = vadd.f32 %v425_v60, %v424_v58 }
 0x1bd   :  { %v422_v63 = vrot.slane %v421_v61, 1  ;;  %v427_v0 = vrot.slane %v426_v62, 2 }
 0x1bf   :  { %v423_v1 = vadd.f32 %v422_v63, %v421_v61  ;;  %v428_v2 = vadd.f32 %v427_v0, %v426_v62 }
 0x1c1   :  { %2990 = vrcp.f32 %v423_v1  ;;  %v429_v3 = vrot.slane %v428_v2, 1 }
 0x1c3   :  { %v430_v4 = vadd.f32 %v429_v3, %v428_v2 }
 0x1c5   :  { %2992 = vrcp.f32 %v430_v4 }
 0x1ce   :  { %v2991_v6 = vpop.eup %2990 }
 0x1cf   :  { %v433_v7 = vmul.f32 %v2991_v6, %v2987_v53 }
 0x1d1   :  { %2793 = vmatmul.mubr.msk.f32.vlgmr.msra.gmra.mxu0 %vm396_vm3, %v433_v7 }
 0x1d2   :  { %v2993_v15 = vpop.eup %2992  ;;  %2803 = vmatpush3.msra.mxu0 %v2546_v30  ;;  %2810 = vmatprep.mubr.msk.f32.mxu0 %vm47_vm0, %v3134_v11 }
 0x1d3   :  { %v434_v17 = vmul.f32 %v2993_v15, %v2989_v56  ;;  %2804 = vmatprep.subr.mxu0 %v2545_v9 }
 0x1d4   :  { %2805 = vmatpush3.msra.mxu0 %v2545_v9 }
 0x1d5   :  { %2800 = vmatmul.mubr.msk.f32.vlgmr.msra.gmra.mxu1 %vm396_vm3, %v434_v17  ;;  %2806 = vmatprep.subr.mxu0 %v2544_v16 }
 0x1d6   :  { %2814 = vmatpush3.msra.mxu1 %v2554_v29  ;;  %2821 = vmatprep.mubr.msk.f32.mxu1 %vm47_vm0, %v3108_v5 }
 0x1d7   :  { %2815 = vmatprep.subr.mxu1 %v2553_v18  ;;  %2807 = vmatpush3.msra.mxu0 %v2544_v16 }
 0x1d8   :  { %2816 = vmatpush3.msra.mxu1 %v2553_v18  ;;  %2808 = vmatprep.subr.mxu0 %v2543_v19 }
 0x1d9   :  { %2817 = vmatprep.subr.mxu1 %v2552_v20  ;;  %2809 = vmatpush3.msra.mxu0 %v2543_v19 }
 0x1da   :  { %2818 = vmatpush3.msra.mxu1 %v2552_v20  ;;  %2811 = vmatmul.mubr.msk.f32.vlgmr.msra.gmra.mxu0 %vm47_vm0, %v3141_v12 }
 0x1db   :  { %2819 = vmatprep.subr.mxu1 %v2551_v21  ;;  %2827 = vmatprep.subr.mxu0 %v3040_v14 }
 0x1dc   :  { %2820 = vmatpush3.msra.mxu1 %v2551_v21  ;;  %2831 = vmatprep.mubr.msk.f32.mxu0 %vm3041_vm1, %v3040_v14 }
 0x1dd   :  { %2822 = vmatmul.mubr.msk.f32.vlgmr.msra.gmra.mxu1 %vm47_vm0, %v3121_v8  ;;  %2834 = vmatprep.subr.mxu1 %v3040_v14 }
 0x1de   :  { %2824 = vmatprep.mubr.msk.f32.mxu1 %vm47_vm0, %v3129_v10 }
 0x1e1   :  { %2825 = vmatmul.mubr.msk.f32.gmra.mxu1 %vm47_vm0, %v3148_v13 }
 0x1e2   :  { %2838 = vmatprep.mubr.msk.f32.mxu1 %vm3041_vm1, %v3040_v14 }
 0x291   :  { %v3232_v22 = vpop.f32.mrf.mxu0 }
 0x293   :  { %v2794_v23 = vpop.f32.mrf.mxu0 }
 0x295   :  { %v3234_v24 = vpop.f32.mrf.mxu1 }
 0x297   :  { %v2801_v25 = vpop.f32.mrf.mxu1 }
 0x29a   :  { %v2812_v27 = vpop.f32.mrf.mxu0 }
 0x29b   :  { %v667_v39 = vadd.f32 %v2812_v27, %v2548_v31 }
 0x29c   :  { %v661_v32 = vpop.f32.mrf.mxu0 }
 0x29d   :  { %v2823_v28 = vpop.f32.mrf.mxu1  ;;  %v662_v37 = vadd.f32 %v2548_v31, %v661_v32  ;;  %v2577_v31 = vld [vmem:[%s3454_s2 + $0x58] sm:$0xff] }
 0x29e   :  { %v755_v29 = vadd.f32 %v2823_v28, %v2556_v26  ;;  %v2585_v28 = vld [vmem:[%s3456_s4 + $0x58] sm:$0xff] }
 0x29f   :  { %v749_v30 = vpop.f32.mrf.mxu1 }
 0x2a0   :  { %2828 = vmatpush3.xpose.msk.msra.mxu0 %vm237_vm2, %v755_v29  ;;  %v750_v34 = vadd.f32 %v2556_v26, %v749_v30  ;;  %v2583_v30 = vld [vmem:[%s3456_s4 + $0x48] sm:$0xff] }
 0x2a1   :  { %v2826_v33 = vpop.f32.mrf.mxu1  ;;  %2829 = vmatprep.subr.mxu0 %v3040_v14 }
 0x2a2   :  { %v765_v35 = vadd.f32 %v2826_v33, %v2556_v26 }
 0x2a3   :  { %v759_v36 = vpop.f32.mrf.mxu1 }
 0x2a4   :  { %2830 = vmatpush3.xpose.msk.msra.mxu0 %vm237_vm2, %v750_v34  ;;  %2835 = vmatpush3.xpose.msk.msra.mxu1 %vm237_vm2, %v765_v35  ;;  %v760_v38 = vadd.f32 %v2556_v26, %v759_v36 }
 0x2a5   :  { %2836 = vmatprep.subr.mxu1 %v3040_v14  ;;  %2841 = vmatprep.subr.mxu0 %v3040_v14 }
 0x2a7   :  { %2832 = vmatmul.mubr.msk.f32.vlgmr.msra.gmra.mxu0 %vm237_vm2, %v662_v37  ;;  %v2575_v37 = vld [vmem:[%s3454_s2 + $0x48] sm:$0xff] }
 0x2a8   :  { %2837 = vmatpush3.xpose.msk.msra.mxu1 %vm237_vm2, %v760_v38  ;;  %2842 = vmatpush3.msra.mxu0 %v755_v29  ;;  %v2584_v29 = vld [vmem:[%s3456_s4 + $0x50] sm:$0xff] }
 0x2a9   :  { %2843 = vmatprep.subr.mxu0 %v3040_v14  ;;  %2848 = vmatprep.subr.mxu1 %v3040_v14 }
 0x2aa   :  { %2844 = vmatpush3.msra.mxu0 %v750_v34  ;;  %2845 = vmatprep.mubr.msk.f32.mxu0 %vm3041_vm1, %v3040_v14 }
 0x2ab   :  { %2839 = vmatmul.mubr.msk.f32.vlgmr.msra.gmra.mxu1 %vm237_vm2, %v667_v39 }
 0x2ac   :  { %2849 = vmatpush3.msra.mxu1 %v765_v35  ;;  %2852 = vmatprep.mubr.msk.f32.mxu1 %vm3041_vm1, %v3040_v14  ;;  %v2576_v35 = vld [vmem:[%s3454_s2 + $0x50] sm:$0xff] }
 0x2ad   :  { %2850 = vmatprep.subr.mxu1 %v3040_v14 }
 0x2ae   :  { %2851 = vmatpush3.msra.mxu1 %v760_v38  ;;  %v2574_v38 = vld [vmem:[%s3454_s2 + $0x40] sm:$0xff] }
 0x2af   :  { %2860 = vmatprep.subr.mxu1 %v581_v40 }
 0x367   :  { %v843_v41 = vpop.f32.mrf.mxu0 }
 0x368   :  { %v926_v42 = vsel %vm396_vm3, %v843_v41, -inf }
 0x369   :  { %v927_v43 = vrot.slane %v926_v42, 4  ;;  %v2833_v44 = vpop.f32.mrf.mxu0 }
 0x36b   :  { %v928_v45 = vmax.f32 %v926_v42, %v927_v43  ;;  %v922_v46 = vpop.f32.mrf.mxu1 }
 0x36c   :  { %v933_v47 = vsel %vm396_vm3, %v922_v46, -inf }
 0x36d   :  { %v929_v48 = vrot.slane %v928_v45, 2  ;;  %v934_v49 = vrot.slane %v933_v47, 4  ;;  %v2840_v50 = vpop.f32.mrf.mxu1 }
 0x36f   :  { %v930_v51 = vmax.f32 %v928_v45, %v929_v48  ;;  %v935_v52 = vmax.f32 %v933_v47, %v934_v49 }
 0x371   :  { %v931_v53 = vrot.slane %v930_v51, 1  ;;  %v936_v54 = vrot.slane %v935_v52, 2 }
 0x373   :  { %v932_v55 = vmax.f32 %v930_v51, %v931_v53  ;;  %v937_v56 = vmax.f32 %v935_v52, %v936_v54  ;;  %v2579_v52 = vld [vmem:[%s3455_s3 + $0x2] ss:$0 sm:$0xff] }
 0x375   :  { %v940_v57 = vsub.f32 %v843_v41, %v932_v55  ;;  %v938_v58 = vrot.slane %v937_v56, 1  ;;  %v2587_v41 = vld [vmem:[%s3457_s5 + $0x2] ss:$0 sm:$0xff] }
 0x377   :  { %v942_v59 = vmul.f32 1.442695, %v940_v57  ;;  %v939_v60 = vmax.f32 %v937_v56, %v938_v58 }
 0x379   :  { %2994 = vpow2.f32 %v942_v59  ;;  %v941_v61 = vsub.f32 %v922_v46, %v939_v60 }
 0x37b   :  { %v944_v62 = vmul.f32 1.442695, %v941_v61 }
 0x37d   :  { %2996 = vpow2.f32 %v944_v62 }
 0x386   :  { %v2995_v63 = vpop.eup %2994 }
 0x387   :  { %v946_v0 = vsel %vm396_vm3, %v2995_v63, 0.0 }
 0x388   :  { %v947_v1 = vrot.slane %v946_v0, 4 }
 0x38a   :  { %v2997_v2 = vpop.eup %2996  ;;  %v948_v3 = vadd.f32 %v947_v1, %v946_v0 }
 0x38b   :  { %v953_v4 = vsel %vm396_vm3, %v2997_v2, 0.0 }
 0x38c   :  { %v949_v6 = vrot.slane %v948_v3, 2  ;;  %v954_v7 = vrot.slane %v953_v4, 4 }
 0x38e   :  { %v950_v9 = vadd.f32 %v949_v6, %v948_v3  ;;  %v955_v15 = vadd.f32 %v954_v7, %v953_v4 }
 0x390   :  { %v951_v16 = vrot.slane %v950_v9, 1  ;;  %v956_v17 = vrot.slane %v955_v15, 2 }
 0x392   :  { %v952_v18 = vadd.f32 %v951_v16, %v950_v9  ;;  %v957_v19 = vadd.f32 %v956_v17, %v955_v15 }
 0x394   :  { %2998 = vrcp.f32 %v952_v18  ;;  %v958_v20 = vrot.slane %v957_v19, 1 }
 0x396   :  { %v959_v21 = vadd.f32 %v958_v20, %v957_v19 }
 0x398   :  { %3000 = vrcp.f32 %v959_v21 }
 0x3a1   :  { %v2999_v23 = vpop.eup %2998 }
 0x3a2   :  { %v962_v25 = vmul.f32 %v2999_v23, %v2995_v63 }
 0x3a4   :  { %2846 = vmatmul.mubr.msk.f32.vlgmr.msra.gmra.mxu0 %vm396_vm3, %v962_v25 }
 0x3a5   :  { %v3001_v26 = vpop.eup %3000 }
 0x3a6   :  { %v963_v27 = vmul.f32 %v3001_v26, %v2997_v2 }
 0x3a8   :  { %2853 = vmatmul.mubr.msk.f32.vlgmr.msra.gmra.mxu1 %vm396_vm3, %v963_v27 }
 0x3a9   :  { %2862 = vmatprep.mubr.msk.f32.mxu1 %vm237_vm2, %v3232_v22  ;;  %2861 = vmatpush3.msra.mxu1 %v581_v40  ;;  %v2582_v22 = vld [vmem:[%s3456_s4 + $0x40] sm:$0xff] }
 0x3aa   :  { %2876 = vmatprep.subr.mxu1 %v2585_v28 }
 0x3ac   :  { %2863 = vmatmul.mubr.msk.f32.vlgmr.msra.gmra.mxu1 %vm237_vm2, %v3234_v24  ;;  %v2569_v24 = vld [vmem:[%s3458_s6 + $0x8] sm:$0xff] }
 0x3ad   :  { %2877 = vmatpush3.msra.mxu1 %v2585_v28  ;;  %2884 = vmatprep.mubr.msk.f32.mxu1 %vm47_vm0, %v3108_v5 }
 0x3ae   :  { %2878 = vmatprep.subr.mxu1 %v2584_v29  ;;  %2855 = vmatprep.subr.mxu0 %v2569_v24 }
 0x3af   :  { %2879 = vmatpush3.msra.mxu1 %v2584_v29  ;;  %2856 = vmatpush3.msra.mxu0 %v2569_v24 }
 0x3b0   :  { %2880 = vmatprep.subr.mxu1 %v2583_v30  ;;  %2865 = vmatprep.subr.mxu0 %v2577_v31 }
 0x3b1   :  { %2881 = vmatpush3.msra.mxu1 %v2583_v30 }
 0x3b2   :  { %2882 = vmatprep.subr.mxu1 %v2582_v22 }
 0x3b3   :  { %2883 = vmatpush3.msra.mxu1 %v2582_v22 }
 0x3b4   :  { %2885 = vmatmul.mubr.msk.f32.vlgmr.msra.gmra.mxu1 %vm47_vm0, %v3121_v8  ;;  %2897 = vmatprep.subr.mxu1 %v3040_v14 }
 0x3b5   :  { %2887 = vmatprep.mubr.msk.f32.mxu1 %vm47_vm0, %v3129_v10 }
 0x3b8   :  { %2888 = vmatmul.mubr.msk.f32.gmra.mxu1 %vm47_vm0, %v3148_v13 }
 0x3b9   :  { %2901 = vmatprep.mubr.msk.f32.mxu1 %vm3041_vm1, %v3040_v14 }
 0x464   :  { %v1033_v32 = vpop.f32.mrf.mxu0 }
 0x465   :  { %2857 = vmatprep.mubr.msk.f32.mxu0 %vm237_vm2, %v1033_v32 }
 0x466   :  { %v2847_v33 = vpop.f32.mrf.mxu0 }
 0x468   :  { %v1106_v34 = vpop.f32.mrf.mxu1 }
 0x469   :  { %2858 = vmatmul.mubr.msk.f32.vlgmr.msra.gmra.mxu0 %vm237_vm2, %v1106_v34 }
 0x46a   :  { %2866 = vmatpush3.msra.mxu0 %v2577_v31  ;;  %v2854_v36 = vpop.f32.mrf.mxu1  ;;  %2873 = vmatprep.mubr.msk.f32.mxu0 %vm47_vm0, %v3134_v11 }
 0x46b   :  { %2867 = vmatprep.subr.mxu0 %v2576_v35 }
 0x46c   :  { %2868 = vmatpush3.msra.mxu0 %v2576_v35  ;;  %v3313_v39 = vpop.f32.mrf.mxu1 }
 0x46d   :  { %2869 = vmatprep.subr.mxu0 %v2575_v37 }
 0x46e   :  { %2870 = vmatpush3.msra.mxu0 %v2575_v37  ;;  %v3318_v40 = vpop.f32.mrf.mxu1 }
 0x46f   :  { %2871 = vmatprep.subr.mxu0 %v2574_v38 }
 0x470   :  { %2872 = vmatpush3.msra.mxu0 %v2574_v38 }
 0x471   :  { %2874 = vmatmul.mubr.msk.f32.vlgmr.msra.gmra.mxu0 %vm47_vm0, %v3141_v12  ;;  %2890 = vmatprep.subr.mxu0 %v3040_v14 }
 0x472   :  { %2894 = vmatprep.mubr.msk.f32.mxu0 %vm3041_vm1, %v3040_v14 }
 0x474   :  { %v2886_v42 = vpop.f32.mrf.mxu1 }
 0x475   :  { %v1447_v43 = vadd.f32 %v2886_v42, %v2587_v41 }
 0x476   :  { %v1441_v44 = vpop.f32.mrf.mxu1 }
 0x477   :  { %v1442_v45 = vadd.f32 %v2587_v41, %v1441_v44  ;;  %2891 = vmatpush3.xpose.msk.msra.mxu0 %vm237_vm2, %v1447_v43  ;;  %v2600_v44 = vld [vmem:[%s3458_s6 + $0x10] sm:$0xff] }
 0x478   :  { %v2889_v46 = vpop.f32.mrf.mxu1  ;;  %2892 = vmatprep.subr.mxu0 %v3040_v14 }
 0x479   :  { %v1457_v47 = vadd.f32 %v2889_v46, %v2587_v41  ;;  %v2606_v46 = vld [vmem:[%s3454_s2 + $0x78] sm:$0xff] }
 0x47a   :  { %v1451_v48 = vpop.f32.mrf.mxu1 }
 0x47b   :  { %2893 = vmatpush3.xpose.msk.msra.mxu0 %vm237_vm2, %v1442_v45  ;;  %2898 = vmatpush3.xpose.msk.msra.mxu1 %vm237_vm2, %v1457_v47  ;;  %v1452_v49 = vadd.f32 %v2587_v41, %v1451_v48  ;;  %v2603_v48 = vld [vmem:[%s3454_s2 + $0x60] sm:$0xff] }
 0x47c   :  { %2899 = vmatprep.subr.mxu1 %v3040_v14  ;;  %2904 = vmatprep.subr.mxu0 %v3040_v14 }
 0x47f   :  { %2900 = vmatpush3.xpose.msk.msra.mxu1 %vm237_vm2, %v1452_v49 }
 0x480   :  { %2911 = vmatprep.subr.mxu1 %v3040_v14 }
 0x529   :  { %v3333_v50 = vpop.f32.mrf.mxu0 }
 0x52b   :  { %v3335_v51 = vpop.f32.mrf.mxu0 }
 0x531   :  { %v2875_v53 = vpop.f32.mrf.mxu0 }
 0x532   :  { %v1359_v54 = vadd.f32 %v2875_v53, %v2579_v52 }
 0x533   :  { %v1353_v55 = vpop.f32.mrf.mxu0 }
 0x534   :  { %v1354_v56 = vadd.f32 %v2579_v52, %v1353_v55  ;;  %2902 = vmatmul.mubr.msk.f32.vlgmr.msra.gmra.mxu1 %vm237_vm2, %v1359_v54  ;;  %v2613_v54 = vld [vmem:[%s3456_s4 + $0x70] sm:$0xff] }
 0x535   :  { %2912 = vmatpush3.msra.mxu1 %v1457_v47  ;;  %2915 = vmatprep.mubr.msk.f32.mxu1 %vm3041_vm1, %v3040_v14  ;;  %v2604_v47 = vld [vmem:[%s3454_s2 + $0x68] sm:$0xff] }
 0x536   :  { %2913 = vmatprep.subr.mxu1 %v3040_v14  ;;  %2895 = vmatmul.mubr.msk.f32.vlgmr.msra.gmra.mxu0 %vm237_vm2, %v1354_v56  ;;  %v2611_v56 = vld [vmem:[%s3456_s4 + $0x60] sm:$0xff] }
 0x537   :  { %2905 = vmatpush3.msra.mxu0 %v1447_v43  ;;  %2914 = vmatpush3.msra.mxu1 %v1452_v49 }
 0x538   :  { %2906 = vmatprep.subr.mxu0 %v3040_v14  ;;  %2908 = vmatprep.mubr.msk.f32.mxu0 %vm3041_vm1, %v3040_v14 }
 0x539   :  { %2907 = vmatpush3.msra.mxu0 %v1442_v45  ;;  %v2614_v45 = vld [vmem:[%s3456_s4 + $0x78] sm:$0xff]  ;;  %2923 = vmatprep.subr.mxu1 %v2606_v46 }
 0x53a   :  { %2918 = vmatprep.subr.mxu0 %v2600_v44 }
 0x5f4   :  { %v1614_v57 = vpop.f32.mrf.mxu1 }
 0x5f5   :  { %v1625_v58 = vsel %vm396_vm3, %v1614_v57, -inf }
 0x5f6   :  { %v1626_v59 = vrot.slane %v1625_v58, 4  ;;  %v1535_v60 = vpop.f32.mrf.mxu0  ;;  %v2903_v61 = vpop.f32.mrf.mxu1 }
 0x5f7   :  { %v1618_v62 = vsel %vm396_vm3, %v1535_v60, -inf }
 0x5f8   :  { %v1627_v63 = vmax.f32 %v1625_v58, %v1626_v59  ;;  %v1619_v0 = vrot.slane %v1618_v62, 4  ;;  %v2896_v1 = vpop.f32.mrf.mxu0  ;;  %v1266_v58 = vadd.f32 %v3318_v40, %v3335_v51 }
 0x5fa   :  { %v1628_v2 = vrot.slane %v1627_v63, 2  ;;  %v1620_v3 = vmax.f32 %v1618_v62, %v1619_v0 }
 0x5fc   :  { %v1629_v4 = vmax.f32 %v1627_v63, %v1628_v2  ;;  %v1621_v6 = vrot.slane %v1620_v3, 2 }
 0x5fe   :  { %v1630_v7 = vrot.slane %v1629_v4, 1  ;;  %v1622_v9 = vmax.f32 %v1620_v3, %v1621_v6 }
 0x600   :  { %v1631_v15 = vmax.f32 %v1629_v4, %v1630_v7  ;;  %v1623_v16 = vrot.slane %v1622_v9, 1 }
 0x602   :  { %v1633_v17 = vsub.f32 %v1614_v57, %v1631_v15  ;;  %v1624_v18 = vmax.f32 %v1622_v9, %v1623_v16 }
 0x604   :  { %v1636_v19 = vmul.f32 1.442695, %v1633_v17  ;;  %v1632_v20 = vsub.f32 %v1535_v60, %v1624_v18 }
 0x606   :  { %3002 = vpow2.f32 %v1636_v19  ;;  %v1634_v21 = vmul.f32 1.442695, %v1632_v20 }
 0x608   :  { %3004 = vpow2.f32 %v1634_v21 }
 0x613   :  { %v3003_v23 = vpop.eup %3002 }
 0x614   :  { %v1645_v25 = vsel %vm396_vm3, %v3003_v23, 0.0 }
 0x615   :  { %v3005_v26 = vpop.eup %3004  ;;  %v1646_v27 = vrot.slane %v1645_v25, 4 }
 0x616   :  { %v1638_v28 = vsel %vm396_vm3, %v3005_v26, 0.0 }
 0x617   :  { %v1647_v29 = vadd.f32 %v1646_v27, %v1645_v25  ;;  %v1639_v30 = vrot.slane %v1638_v28, 4 }
 0x619   :  { %v1648_v22 = vrot.slane %v1647_v29, 2  ;;  %v1640_v24 = vadd.f32 %v1639_v30, %v1638_v28 }
 0x61b   :  { %v1649_v31 = vadd.f32 %v1648_v22, %v1647_v29  ;;  %v1641_v32 = vrot.slane %v1640_v24, 2 }
 0x61d   :  { %v1650_v33 = vrot.slane %v1649_v31, 1  ;;  %v1642_v34 = vadd.f32 %v1641_v32, %v1640_v24 }
 0x61f   :  { %v1651_v35 = vadd.f32 %v1650_v33, %v1649_v31  ;;  %v1643_v36 = vrot.slane %v1642_v34, 1 }
 0x621   :  { %3006 = vrcp.f32 %v1651_v35  ;;  %v1644_v37 = vadd.f32 %v1643_v36, %v1642_v34 }
 0x623   :  { %3008 = vrcp.f32 %v1644_v37 }
 0x62e   :  { %v3007_v38 = vpop.eup %3006 }
 0x62f   :  { %v1655_v41 = vmul.f32 %v3007_v38, %v3003_v23 }
 0x630   :  { %v3009_v42 = vpop.eup %3008 }
 0x631   :  { %2916 = vmatmul.mubr.msk.f32.vlgmr.msra.gmra.mxu1 %vm396_vm3, %v1655_v41  ;;  %v1654_v43 = vmul.f32 %v3009_v42, %v3005_v26 }
 0x632   :  { %2931 = vmatprep.mubr.msk.f32.mxu1 %vm47_vm0, %v3134_v11  ;;  %2924 = vmatpush3.msra.mxu1 %v2606_v46  ;;  %v2605_v11 = vld [vmem:[%s3454_s2 + $0x70] sm:$0xff] }
 0x633   :  { %2909 = vmatmul.mubr.msk.f32.vlgmr.msra.gmra.mxu0 %vm396_vm3, %v1654_v43  ;;  %2925 = vmatprep.subr.mxu1 %v2605_v11 }
 0x634   :  { %2919 = vmatpush3.msra.mxu0 %v2600_v44  ;;  %2926 = vmatpush3.msra.mxu1 %v2605_v11 }
 0x635   :  { %2934 = vmatprep.subr.mxu0 %v2614_v45  ;;  %2927 = vmatprep.subr.mxu1 %v2604_v47 }
 0x636   :  { %2928 = vmatpush3.msra.mxu1 %v2604_v47 }
 0x637   :  { %2929 = vmatprep.subr.mxu1 %v2603_v48 }
 0x638   :  { %2930 = vmatpush3.msra.mxu1 %v2603_v48 }
 0x639   :  { %2932 = vmatmul.mubr.msk.f32.vlgmr.msra.gmra.mxu1 %vm47_vm0, %v3141_v12  ;;  %2948 = vmatprep.subr.mxu1 %v3040_v14  ;;  %v2612_v12 = vld [vmem:[%s3456_s4 + $0x68] sm:$0xff] }
 0x63a   :  { %2952 = vmatprep.mubr.msk.f32.mxu1 %vm3041_vm1, %v3040_v14 }
 0x6f1   :  { %v1798_v49 = vpop.f32.mrf.mxu1 }
 0x6f3   :  { %v1725_v52 = vpop.f32.mrf.mxu0  ;;  %v2917_v53 = vpop.f32.mrf.mxu1 }
 0x6f4   :  { %2920 = vmatprep.mubr.msk.f32.mxu0 %vm237_vm2, %v1725_v52 }
 0x6f5   :  { %v2910_v55 = vpop.f32.mrf.mxu0  ;;  %2921 = vmatmul.mubr.msk.f32.vlgmr.msra.gmra.mxu0 %vm237_vm2, %v1798_v49 }
 0x6f6   :  { %2935 = vmatpush3.msra.mxu0 %v2614_v45  ;;  %2942 = vmatprep.mubr.msk.f32.mxu0 %vm47_vm0, %v3108_v5  ;;  %v1271_v5 = vadd.f32 %v3313_v39, %v3333_v50  ;;  %v2608_v39 = vld [vmem:[%s3455_s3 + $0x3] ss:$0 sm:$0xff] }
 0x6f7   :  { %2936 = vmatprep.subr.mxu0 %v2613_v54 }
 0x6f8   :  { %2937 = vmatpush3.msra.mxu0 %v2613_v54 }
 0x6f9   :  { %2938 = vmatprep.subr.mxu0 %v2612_v12 }
 0x6fa   :  { %2939 = vmatpush3.msra.mxu0 %v2612_v12  ;;  %v2629_v12 = vld [vmem:[%s3458_s6 + $0x18] sm:$0xff]  ;;  %s3018_s6 = scalar_lea.vmem %s2517_s10, 256 }
 0x6fb   :  { %2940 = vmatprep.subr.mxu0 %v2611_v56  ;;  %p3019_p0 = scmp.ne.s32.totalorder %s2517_s10, %s3018_s6  ;;  %p3024_p2 = scmp.lt.s32.totalorder %s3018_s6, %s3018_s6 }
 0x6fc   :  { %2941 = vmatpush3.msra.mxu0 %v2611_v56 }
 0x6fd   :  { %2943 = vmatmul.mubr.msk.f32.vlgmr.msra.gmra.mxu0 %vm47_vm0, %v3121_v8  ;;  %2955 = vmatprep.subr.mxu0 %v3040_v14  ;;  %p3025_p3 = por %p3024_p2, %p3023_p1 }
 0x6fe   :  { %2945 = vmatprep.mubr.msk.f32.mxu0 %vm47_vm0, %v3129_v10  ;;  %v2616_v10 = vld [vmem:[%s3457_s5 + $0x3] ss:$0 sm:$0xff] }
 0x6ff   :  { %p3026_p4 = pnand %p3025_p3, %p3019_p0 }
 0x701   :  { %2946 = vmatmul.mubr.msk.f32.gmra.mxu0 %vm47_vm0, %v3148_v13  ;;  %v2933_v13 = vpop.f32.mrf.mxu1 }
 0x702   :  { %2959 = vmatprep.mubr.msk.f32.mxu0 %vm3041_vm1, %v3040_v14  ;;  %v1972_v4 = vadd.f32 %v2933_v13, %v2608_v39 }
 0x703   :  { %v1966_v40 = vpop.f32.mrf.mxu1 }
 0x704   :  { %v1967_v2 = vadd.f32 %v2608_v39, %v1966_v40 }
 0x7b5   :  { %v2922_v57 = vpop.f32.mrf.mxu0 }
 0x7b6   :  { %v3405_v59 = vadd.f32 %v2922_v57, %v1271_v5 }
 0x7b7   :  { %v1876_v8 = vpop.f32.mrf.mxu0 }
 0x7b8   :  { %v3407_v60 = vadd.f32 %v1876_v8, %v1266_v58 }
 0x7bd   :  { %v2944_v61 = vpop.f32.mrf.mxu0 }
 0x7be   :  { %v2060_v62 = vadd.f32 %v2944_v61, %v2616_v10 }
 0x7bf   :  { %v2054_v63 = vpop.f32.mrf.mxu0 }
 0x7c0   :  { %2949 = vmatpush3.xpose.msk.msra.mxu1 %vm237_vm2, %v2060_v62  ;;  %v2055_v51 = vadd.f32 %v2616_v10, %v2054_v63 }
 0x7c1   :  { %v2947_v50 = vpop.f32.mrf.mxu0  ;;  %2950 = vmatprep.subr.mxu1 %v3040_v14 }
 0x7c2   :  { %v2070_v0 = vadd.f32 %v2947_v50, %v2616_v10 }
 0x7c3   :  { %v2064_v1 = vpop.f32.mrf.mxu0 }
 0x7c4   :  { %2951 = vmatpush3.xpose.msk.msra.mxu1 %vm237_vm2, %v2055_v51  ;;  %2956 = vmatpush3.xpose.msk.msra.mxu0 %vm237_vm2, %v2070_v0  ;;  %v2065_v3 = vadd.f32 %v2616_v10, %v2064_v1  ;;  %v2632_v10 = vld [vmem:[%s3459_s7] ss:$0 sm:$0xff] }
 0x7c5   :  { %2957 = vmatprep.subr.mxu0 %v3040_v14  ;;  %2962 = vmatprep.subr.mxu1 %v3040_v14 }
 0x7c7   :  { %2953 = vmatmul.mubr.msk.f32.vlgmr.msra.gmra.mxu1 %vm237_vm2, %v1967_v2 }
 0x7c8   :  { %2958 = vmatpush3.xpose.msk.msra.mxu0 %vm237_vm2, %v2065_v3  ;;  %2963 = vmatpush3.msra.mxu1 %v2060_v62 }
 0x7c9   :  { %2964 = vmatprep.subr.mxu1 %v3040_v14  ;;  %2969 = vmatprep.subr.mxu0 %v3040_v14 }
 0x7ca   :  { %2965 = vmatpush3.msra.mxu1 %v2055_v51  ;;  %2966 = vmatprep.mubr.msk.f32.mxu1 %vm3041_vm1, %v3040_v14 }
 0x7cb   :  { %2960 = vmatmul.mubr.msk.f32.vlgmr.msra.gmra.mxu0 %vm237_vm2, %v1972_v4  ;;  %2976 = vmatprep.subr.mxu1 %v2629_v12 }
 0x7cc   :  { %2970 = vmatpush3.msra.mxu0 %v2070_v0  ;;  %2973 = vmatprep.mubr.msk.f32.mxu0 %vm3041_vm1, %v3040_v14 }
 0x7cd   :  { %2971 = vmatprep.subr.mxu0 %v3040_v14 }
 0x7ce   :  { %2972 = vmatpush3.msra.mxu0 %v2065_v3 }
 0x887   :  { %v2148_v6 = vpop.f32.mrf.mxu1 }
 0x888   :  { %v2231_v7 = vsel %vm396_vm3, %v2148_v6, -inf }
 0x889   :  { %v2232_v9 = vrot.slane %v2231_v7, 4  ;;  %v2954_v15 = vpop.f32.mrf.mxu1 }
 0x88b   :  { %v2233_v16 = vmax.f32 %v2231_v7, %v2232_v9  ;;  %v2227_v17 = vpop.f32.mrf.mxu0 }
 0x88c   :  { %v2238_v18 = vsel %vm396_vm3, %v2227_v17, -inf }
 0x88d   :  { %v2234_v19 = vrot.slane %v2233_v16, 2  ;;  %v2239_v20 = vrot.slane %v2238_v18, 4  ;;  %v2961_v21 = vpop.f32.mrf.mxu0 }
 0x88f   :  { %v2235_v23 = vmax.f32 %v2233_v16, %v2234_v19  ;;  %v2240_v25 = vmax.f32 %v2238_v18, %v2239_v20 }
 0x891   :  { %v2236_v26 = vrot.slane %v2235_v23, 1  ;;  %v2241_v27 = vrot.slane %v2240_v25, 2 }
 0x893   :  { %v2237_v28 = vmax.f32 %v2235_v23, %v2236_v26  ;;  %v2242_v29 = vmax.f32 %v2240_v25, %v2241_v27 }
 0x895   :  { %v2245_v14 = vsub.f32 %v2148_v6, %v2237_v28  ;;  %v2243_v30 = vrot.slane %v2242_v29, 1 }
 0x897   :  { %v2247_v22 = vmul.f32 1.442695, %v2245_v14  ;;  %v2244_v24 = vmax.f32 %v2242_v29, %v2243_v30 }
 0x899   :  { %3010 = vpow2.f32 %v2247_v22  ;;  %v2246_v31 = vsub.f32 %v2227_v17, %v2244_v24 }
 0x89b   :  { %v2249_v32 = vmul.f32 1.442695, %v2246_v31 }
 0x89d   :  { %3012 = vpow2.f32 %v2249_v32 }
 0x8a6   :  { %v3011_v33 = vpop.eup %3010 }
 0x8a7   :  { %v2251_v34 = vsel %vm396_vm3, %v3011_v33, 0.0 }
 0x8a8   :  { %v2252_v35 = vrot.slane %v2251_v34, 4 }
 0x8aa   :  { %v3013_v36 = vpop.eup %3012  ;;  %v2253_v37 = vadd.f32 %v2252_v35, %v2251_v34 }
 0x8ab   :  { %v2258_v38 = vsel %vm396_vm3, %v3013_v36, 0.0 }
 0x8ac   :  { %v2254_v41 = vrot.slane %v2253_v37, 2  ;;  %v2259_v42 = vrot.slane %v2258_v38, 4 }
 0x8ae   :  { %v2255_v43 = vadd.f32 %v2254_v41, %v2253_v37  ;;  %v2260_v44 = vadd.f32 %v2259_v42, %v2258_v38 }
 0x8b0   :  { %v2256_v45 = vrot.slane %v2255_v43, 1  ;;  %v2261_v46 = vrot.slane %v2260_v44, 2 }
 0x8b2   :  { %v2257_v11 = vadd.f32 %v2256_v45, %v2255_v43  ;;  %v2262_v47 = vadd.f32 %v2261_v46, %v2260_v44 }
 0x8b4   :  { %3014 = vrcp.f32 %v2257_v11  ;;  %v2263_v48 = vrot.slane %v2262_v47, 1 }
 0x8b6   :  { %v2264_v49 = vadd.f32 %v2263_v48, %v2262_v47 }
 0x8b8   :  { %3016 = vrcp.f32 %v2264_v49 }
 0x8c1   :  { %v3015_v52 = vpop.eup %3014 }
 0x8c2   :  { %v2267_v53 = vmul.f32 %v3015_v52, %v3011_v33 }
 0x8c4   :  { %2967 = vmatmul.mubr.msk.f32.vlgmr.msra.gmra.mxu1 %vm396_vm3, %v2267_v53 }
 0x8c5   :  { %v3017_v54 = vpop.eup %3016  ;;  %2977 = vmatpush3.msra.mxu1 %v2629_v12 }
 0x8c6   :  { %v2268_v55 = vmul.f32 %v3017_v54, %v3013_v36 }
 0x8c8   :  { %2974 = vmatmul.mubr.msk.f32.vlgmr.msra.gmra.mxu0 %vm396_vm3, %v2268_v55 }
 0x984   :  { %v2338_v56 = vpop.f32.mrf.mxu1 }
 0x985   :  { %2978 = vmatprep.mubr.msk.f32.mxu1 %vm237_vm2, %v2338_v56 }
 0x986   :  { %v2968_v5 = vpop.f32.mrf.mxu1 }
 0x988   :  { %v2411_v57 = vpop.f32.mrf.mxu0 }
 0x989   :  { %2979 = vmatmul.mubr.msk.f32.vlgmr.msra.gmra.mxu1 %vm237_vm2, %v2411_v57 }
 0x98a   :  { %v2975_v58 = vpop.f32.mrf.mxu0 }
 0xa49   :  { %v2980_v8 = vpop.f32.mrf.mxu1 }
 0xa4a   :  { %v2499_v13 = vadd.f32 %v2980_v8, %v3405_v59 }
 0xa4b   :  { %v2489_v61 = vpop.f32.mrf.mxu1 }
 0xa4c   :  { %v2508_v62 = vadd.f32 %v2632_v10, %v2499_v13  ;;  %v2498_v63 = vadd.f32 %v2489_v61, %v3407_v60 }
 0xa4e   :  { %2510 = vst.msk [vmem:[#allocation2 + $0x8] sm:$0xff] %vm47_vm0, %v2508_v62  ;;  %v2507_v39 = vadd.f32 %v2632_v10, %v2498_v63 }
 0xa50   :  { %2509 = vst.msk [vmem:[#allocation2] sm:$0xff] %vm47_vm0, %v2507_v39 }
 0xa51   :  { %3029 = shalt.err (!%p3026_p4)
}
 0xa52   :  { %s3043_s7 = smov 128   ;;  %s3044_s0 = smov 8  }
 0xa53   :  { %2522 = dma.vmem_to_hbm [thread:$0]  %s2517_s10, 256, %s3460_s8, [#allocation3], %s3043_s7, %s3043_s7, %s3044_s0  }
 0xa54   :  { %3038 = dma.done.wait [#allocation3], 256  }
 0xa55   :  { %3039 = vsyncadd [#allocation3], 4294967040 }
 0xa56   :  { %2526 = vsyncpa [#allocation3], 1 }

</bundles_post_ra>
